<compile_context>
chip_gen: v5e
topology: v5e:2x2
jax: 0.10.0
libtpu: 0.0.40
codegen_flags: <defaults>
</compile_context>

<pallas_src>
import functools

import jax
import jax.numpy as jnp
import numpy as np
from jax import lax
from jax.experimental import pallas as pl
from jax.experimental.pallas import tpu as pltpu

_LANE = 128
_SUBLANE = 8
_TILE_CANDIDATES = (8192, 4096, 2048, 1024, 512, 256, 128, 64, 32, 16, 8)


def _round_up(x: int, m: int) -> int:
    return ((x + m - 1) // m) * m


# ----------------------------------------------------------------------------
# Embedding-dim heuristic (mirrors _embedding_heuristic with Embedders'
# defaults: embedding_lower_bound=10, exp_embedding_scale_factor=0.25, size M)
# ----------------------------------------------------------------------------
def embedding_dim(dim_input: int, model_size: str = "M",
                  embedding_lower_bound: int = 10,
                  embedding_scale_factor: float = 2.8,
                  embedding_exponent: float = 0.23,
                  exp_embedding_scale_factor: float = 0.25) -> int:
    model_size_output_dim = dict(
        S=max(embedding_lower_bound, int(2 * np.ceil(dim_input ** 0.15))),
        M=max(embedding_lower_bound, int(3 * np.ceil(dim_input ** exp_embedding_scale_factor))),
        L=max(embedding_lower_bound, int(4 * np.ceil(dim_input ** 0.33))),
        C=max(embedding_lower_bound, int(embedding_scale_factor * np.ceil(dim_input ** embedding_exponent))),
    )
    return min(dim_input, model_size_output_dim[model_size])


# ----------------------------------------------------------------------------
# Generation-aware VMEM capacity / tile-size selection
# ----------------------------------------------------------------------------
def _vmem_capacity_bytes() -> int:
    try:
        info = pltpu.get_tpu_info()
        for name in ("vmem_capacity_bytes", "vmem_size_bytes", "vmem_bytes"):
            cap = getattr(info, name, None)
            if cap:
                return int(cap)
    except Exception:
        pass
    return 128 << 20   # conservative default (v5e/v6e); tiny shapes unaffected


def _tile_vmem_bytes(tile_n: int, n_cols: int, v_pad: int, d_pad: int) -> int:
    ids_lanes = max(_round_up(n_cols, _LANE), _LANE)
    return (2 * tile_n * ids_lanes * 4     # ids tile, double-buffered (i32)
            + 2 * tile_n * d_pad * 4       # out tile, double-buffered (f32)
            + 3 * tile_n * v_pad * 2       # bf16 one-hot + compare temps
            + tile_n * v_pad * 4)          # iota / headroom


def _pick_tile_n(n: int, n_cols: int, v_pad: int, d_pad: int,
                 vmem_cap: int) -> int:
    """Largest row tile whose working set fits ~75% of VMEM (one-hot scales
    with v_pad, so the cap is conditional on the fused vocabulary size)."""
    tbl_bytes = 2 * v_pad * d_pad * 2            # hi + lo bf16, single-buffered
    budget = max(int(vmem_cap * 0.75) - tbl_bytes - (2 << 20), 1 << 20)
    n8 = _round_up(max(n, 1), _SUBLANE)
    for t in _TILE_CANDIDATES:
        t = min(t, n8)
        if _tile_vmem_bytes(t, n_cols, v_pad, d_pad) <= budget:
            return t
    return _SUBLANE


# ----------------------------------------------------------------------------
# Pallas kernel: fused multi-column padded-index embedding lookup
# ----------------------------------------------------------------------------
def _fused_embed_kernel(ids_ref, hi_ref, lo_ref, out_ref, *, col_meta):
    """One row tile.

    ids_ref : (tile_n, C) int32, -1 = padding
    hi_ref  : (v_pad, d_pad) bf16, fused table rounded to bf16 (resident)
    lo_ref  : (v_pad, d_pad) bf16, f32 residual of the table (resident)
    out_ref : (tile_n, d_pad) f32, concatenated embeddings (zeros in pad lanes)
    col_meta: static tuple of (row_offset, cardinality) per sub-column
    """
    ids = ids_ref[...]                                   # (tile_n, C)
    tile_n = ids.shape[0]
    v_pad = hi_ref.shape[0]

    lanes = lax.broadcasted_iota(jnp.int32, (tile_n, v_pad), 1)

    # Combined one-hot over the fused row axis, built directly in bf16 and
    # accumulated with adds (row ranges are disjoint, so add == or).
    one_hot = None
    for c, (v_off, card) in enumerate(col_meta):         # static loop, C small
        idx = ids[:, c:c + 1]                            # (tile_n, 1)
        # -1 padding -> row 0 of this column; any other out-of-range id is
        # clamped to the column's own range (torch nn.Embedding would raise).
        safe = jnp.clip(idx, 0, card - 1) + v_off
        hit = (lanes == safe).astype(jnp.bfloat16)
        one_hot = hit if one_hot is None else one_hot + hit

    # Two bf16 MXU matmuls (hi + lo) accumulated in f32 emit the concatenation
    # of all column embeddings, ~f32-exact for the one-hot gather.
    acc = jnp.dot(one_hot, hi_ref[...], preferred_element_type=jnp.float32)
    acc = acc + jnp.dot(one_hot, lo_ref[...], preferred_element_type=jnp.float32)
    out_ref[...] = acc


def _fused_embed_lookup(ids_all: jax.Array, tbl_hi: jax.Array,
                        tbl_lo: jax.Array, col_meta: tuple,
                        tile_n: int, vmem_cap: int) -> jax.Array:
    """ids_all: (N_pad, C) int32 with -1 padding (N_pad % tile_n == 0);
    tbl_hi/tbl_lo: (v_pad, d_pad) bf16.  Returns (N_pad, d_pad) f32."""
    n_pad, n_cols = ids_all.shape
    v_pad, d_pad = tbl_hi.shape
    grid = (n_pad // tile_n,)

    tbl_bytes = 2 * v_pad * d_pad * 2
    vmem_limit = int(min(
        max(2 * tbl_bytes + _tile_vmem_bytes(tile_n, n_cols, v_pad, d_pad)
            + (2 << 20), 8 << 20),
        int(vmem_cap * 0.85)))

    cost = pl.CostEstimate(
        flops=int(2 * 2 * n_pad * v_pad * d_pad),        # hi + lo matmuls
        transcendentals=0,
        bytes_accessed=int(ids_all.size * 4 + tbl_hi.size * 2
                           + tbl_lo.size * 2 + n_pad * d_pad * 4),
    )

    kern = functools.partial(_fused_embed_kernel, col_meta=col_meta)
    out_shape = jax.ShapeDtypeStruct((n_pad, d_pad), jnp.float32)
    params = pltpu.CompilerParams(dimension_semantics=("parallel",),
                                  vmem_limit_bytes=vmem_limit)

    def build(resident_table: bool):
        def tbl_spec():
            if resident_table:
                try:
                    # Constant index_map -> single-buffer the resident table,
                    # halving its VMEM footprint.
                    return pl.BlockSpec((v_pad, d_pad), lambda i: (0, 0),
                                        pipeline_mode=pl.Buffered(1))
                except TypeError:
                    pass
            return pl.BlockSpec((v_pad, d_pad), lambda i: (0, 0))

        return pl.pallas_call(
            kern,
            out_shape=out_shape,
            grid=grid,
            in_specs=[
                pl.BlockSpec((tile_n, n_cols), lambda i: (i, 0)),  # ids tile
                tbl_spec(),                                        # hi table
                tbl_spec(),                                        # lo table
            ],
            out_specs=pl.BlockSpec((tile_n, d_pad), lambda i: (i, 0)),
            compiler_params=params,
            cost_estimate=cost,
        )

    try:
        return build(True)(ids_all, tbl_hi, tbl_lo)
    except Exception:
        # Fallback for jax versions that reject single-buffered pipeline mode.
        return build(False)(ids_all, tbl_hi, tbl_lo)


# ----------------------------------------------------------------------------
# SequentialContextEmbedders.forward equivalent
# ----------------------------------------------------------------------------
def sequential_context_embedders_forward(x_padded: dict, tables: dict,
                                         tile_n: int | None = None):
    """x_padded[sub_col]: (B, S, 1) int padded with -1.
    tables[sub_col]: (V_c, D_c) float embedding weights.
    tile_n: optional override of the auto-picked row tile (first thing to sweep).
    Returns (embeddings dict of (B, S, D_c) f32, mask (B, S) bool)."""
    sub_cols = list(x_padded.keys())
    # torch iterates self.cardinalities; the returned mask comes from the LAST
    # sub-column, so iteration order of both dicts must match.
    assert list(tables.keys()) == sub_cols, "sub-column order mismatch"

    b, s, _ = x_padded[sub_cols[0]].shape
    n = b * s
    n_cols = len(sub_cols)

    # 1) stack the per-column index streams into one (N, C) int32 array
    ids_all = jnp.concatenate(
        [x_padded[c].reshape(n, 1).astype(jnp.int32) for c in sub_cols], axis=1)

    # 2) pack per-column tables into one fused (pad8(sum V), pad128(sum D)) slab
    v_offs, d_offs, cards, dims = [], [], [], []
    v_off = d_off = 0
    for c in sub_cols:
        v_c, d_c = tables[c].shape
        v_offs.append(v_off); d_offs.append(d_off)
        cards.append(v_c); dims.append(d_c)
        v_off += v_c; d_off += d_c
    v_total, d_total = v_off, d_off
    v_pad = _round_up(max(v_total, _SUBLANE), _SUBLANE)
    d_pad = _round_up(max(d_total, _LANE), _LANE)

    fused = jnp.zeros((v_pad, d_pad), jnp.float32)
    for i, c in enumerate(sub_cols):
        fused = fused.at[v_offs[i]:v_offs[i] + cards[i],
                         d_offs[i]:d_offs[i] + dims[i]].set(
            tables[c].astype(jnp.float32))

    # split-table bf16 trick: hi + lo reproduces the f32 table to ~2^-18
    # relative error while keeping the MXU on the fast bf16 path.
    tbl_hi = fused.astype(jnp.bfloat16)
    tbl_lo = (fused - tbl_hi.astype(jnp.float32)).astype(jnp.bfloat16)

    # 3) generation-aware row tile + pad the row axis (pad rows = -1)
    vmem_cap = _vmem_capacity_bytes()
    if tile_n is None:
        tile_n = _pick_tile_n(n, n_cols, v_pad, d_pad, vmem_cap)
    tn = _round_up(min(tile_n, _round_up(n, _SUBLANE)), _SUBLANE)
    n_pad = _round_up(n, tn)
    if n_pad != n:
        ids_all = jnp.pad(ids_all, ((0, n_pad - n), (0, 0)), constant_values=-1)

    # 4) one fused, tiled kernel call for all sub-columns
    col_meta = tuple(zip(v_offs, cards))
    out = _fused_embed_lookup(ids_all, tbl_hi, tbl_lo, col_meta, tn, vmem_cap)

    # 5) slice each column's lanes back out and reshape to (B, S, D_c)
    # TODO(synk): consumers that concatenate the embeddings anyway should take
    # the fused (N, d_pad) slab + (d_off, D_c) metadata directly; these
    # non-128-aligned lane slices roughly double output HBM traffic.
    embeddings = {}
    for i, c in enumerate(sub_cols):
        embeddings[c] = out[:n, d_offs[i]:d_offs[i] + dims[i]].reshape(b, s, dims[i])

    # mask: plain XLA elementwise; torch keeps the LAST column's mask
    mask = (x_padded[sub_cols[-1]] != -1).reshape(b, s)
    return embeddings, mask


# ----------------------------------------------------------------------------
# Demo / smoke test
# ----------------------------------------------------------------------------
if __name__ == "__main__":
    key = jax.random.PRNGKey(0)

    # cardinalities of the categorical sub-columns (as in the torch module init)
    cardinalities = {"col_a": 7, "col_b": 23}
    batch, seq = 2, 8   # ragged sequences padded to seq with -1

    # deterministic embedding tables (nn.Embedding weights), model_size="M"
    tables = {}
    for i, (sub_col, card) in enumerate(cardinalities.items()):
        d = embedding_dim(card, model_size="M")
        k = jax.random.fold_in(key, i)
        tables[sub_col] = jax.random.normal(k, (card, d), dtype=jnp.float32)

    # deterministic padded nested-tensor inputs: (B, S, 1) int32, -1 = padding
    seq_lens = [5, 8]   # ragged lengths per batch element
    x_padded = {}
    for i, (sub_col, card) in enumerate(cardinalities.items()):
        k = jax.random.fold_in(key, 100 + i)
        ids = jax.random.randint(k, (batch, seq, 1), 0, card, dtype=jnp.int32)
        valid = (jnp.arange(seq)[None, :, None] <
                 jnp.asarray(seq_lens)[:, None, None])
        x_padded[sub_col] = jnp.where(valid, ids, -1)

    embeddings, mask = sequential_context_embedders_forward(x_padded, tables)
    jax.block_until_ready(embeddings)
    jax.block_until_ready(mask)

    # pure-JAX reference check (same semantics as the torch forward)
    for sub_col in cardinalities:
        ids = x_padded[sub_col]
        safe = jnp.where(ids == -1, 0, ids)
        ref = jnp.take(tables[sub_col], safe.squeeze(-1), axis=0)  # (B,S,D)
        np.testing.assert_allclose(np.asarray(embeddings[sub_col]),
                                   np.asarray(ref), rtol=1e-5, atol=1e-5)
    last_col = list(cardinalities)[-1]
    ref_mask = (x_padded[last_col] != -1).squeeze(-1)
    np.testing.assert_array_equal(np.asarray(mask), np.asarray(ref_mask))

    print("KERNEL_OK")
</pallas_src>

<mosaic_0001>
module attributes {stable_mosaic.version = 11 : i64} {
  func.func @_fused_embed_kernel(%arg0: i32, %arg1: memref<16x2xi32, #tpu.memory_space<vmem>>, %arg2: memref<32x128xbf16, #tpu.memory_space<vmem>>, %arg3: memref<32x128xbf16, #tpu.memory_space<vmem>>, %arg4: memref<16x128xf32, #tpu.memory_space<vmem>>) attributes {dimension_semantics = [#tpu.dimension_semantics<parallel>], iteration_bounds = array<i64: 1>, scalar_prefetch = 0 : i64, scratch_operands = 0 : i64, tpu.core_type = #tpu.core_type<tc>, window_params = [{transform_indices = @transform_0, window_bounds = array<i64: 16, 2>}, {pipeline_mode = #tpu.pipeline_mode<synchronous>, transform_indices = @transform_1, window_bounds = array<i64: 32, 128>}, {pipeline_mode = #tpu.pipeline_mode<synchronous>, transform_indices = @transform_2, window_bounds = array<i64: 32, 128>}, {transform_indices = @transform_3, window_bounds = array<i64: 16, 128>}]} {
    %c0 = arith.constant 0 : index
    %c0_0 = arith.constant 0 : index
    %0 = vector.load %arg1[%c0, %c0_0] : memref<16x2xi32, #tpu.memory_space<vmem>>, vector<16x2xi32>
    %1 = tpu.iota {dimensions = array<i32: 1>} : vector<16x32xi32>
    %2 = vector.extract_strided_slice %0 {offsets = [0, 0], sizes = [16, 1], strides = [1, 1]} : vector<16x2xi32> to vector<16x1xi32>
    %c0_i32 = arith.constant 0 : i32
    %c6_i32 = arith.constant 6 : i32
    %3 = vector.broadcast %c0_i32 : i32 to vector<16x1xi32>
    %4 = arith.maxsi %3, %2 : vector<16x1xi32>
    %5 = vector.broadcast %c6_i32 : i32 to vector<16x1xi32>
    %6 = arith.minsi %5, %4 : vector<16x1xi32>
    %c0_i32_1 = arith.constant 0 : i32
    %7 = vector.broadcast %c0_i32_1 : i32 to vector<16x1xi32>
    %8 = arith.addi %6, %7 : vector<16x1xi32>
    %9 = vector.broadcast %8 : vector<16x1xi32> to vector<16x32xi32>
    %10 = arith.cmpi eq, %1, %9 : vector<16x32xi32>
    %11 = arith.extui %10 : vector<16x32xi1> to vector<16x32xi32>
    %12 = arith.sitofp %11 : vector<16x32xi32> to vector<16x32xf32>
    %13 = arith.truncf %12 : vector<16x32xf32> to vector<16x32xbf16>
    %14 = vector.extract_strided_slice %0 {offsets = [0, 1], sizes = [16, 1], strides = [1, 1]} : vector<16x2xi32> to vector<16x1xi32>
    %c0_i32_2 = arith.constant 0 : i32
    %c22_i32 = arith.constant 22 : i32
    %15 = vector.broadcast %c0_i32_2 : i32 to vector<16x1xi32>
    %16 = arith.maxsi %15, %14 : vector<16x1xi32>
    %17 = vector.broadcast %c22_i32 : i32 to vector<16x1xi32>
    %18 = arith.minsi %17, %16 : vector<16x1xi32>
    %c7_i32 = arith.constant 7 : i32
    %19 = vector.broadcast %c7_i32 : i32 to vector<16x1xi32>
    %20 = arith.addi %18, %19 : vector<16x1xi32>
    %21 = vector.broadcast %20 : vector<16x1xi32> to vector<16x32xi32>
    %22 = arith.cmpi eq, %1, %21 : vector<16x32xi32>
    %23 = arith.extui %22 : vector<16x32xi1> to vector<16x32xi32>
    %24 = arith.sitofp %23 : vector<16x32xi32> to vector<16x32xf32>
    %25 = arith.truncf %24 : vector<16x32xf32> to vector<16x32xbf16>
    %26 = arith.addf %13, %25 : vector<16x32xbf16>
    %c0_3 = arith.constant 0 : index
    %c0_4 = arith.constant 0 : index
    %27 = vector.load %arg2[%c0_3, %c0_4] : memref<32x128xbf16, #tpu.memory_space<vmem>>, vector<32x128xbf16>
    %cst = arith.constant dense<0.000000e+00> : vector<16x128xf32>
    %28 = tpu.matmul %26, %27, %cst {dimension_numbers = #tpu.dot_dimension_numbers<[1], [0], [0], [1], [0, 0, 1, 1], [], []>} : vector<16x32xbf16>, vector<32x128xbf16>, vector<16x128xf32> -> vector<16x128xf32>
    %c0_5 = arith.constant 0 : index
    %c0_6 = arith.constant 0 : index
    %29 = vector.load %arg3[%c0_5, %c0_6] : memref<32x128xbf16, #tpu.memory_space<vmem>>, vector<32x128xbf16>
    %cst_7 = arith.constant dense<0.000000e+00> : vector<16x128xf32>
    %30 = tpu.matmul %26, %29, %cst_7 {dimension_numbers = #tpu.dot_dimension_numbers<[1], [0], [0], [1], [0, 0, 1, 1], [], []>} : vector<16x32xbf16>, vector<32x128xbf16>, vector<16x128xf32> -> vector<16x128xf32>
    %31 = arith.addf %28, %30 : vector<16x128xf32>
    %c0_8 = arith.constant 0 : index
    %c0_9 = arith.constant 0 : index
    %32 = vector.load %arg4[%c0_8, %c0_9] : memref<16x128xf32, #tpu.memory_space<vmem>>, vector<16x128xf32>
    tpu.vector_store %arg4[%c0_8, %c0_9], %31 {strides = array<i32>} : memref<16x128xf32, #tpu.memory_space<vmem>>, vector<16x128xf32>,
    return
  }
  func.func @transform_0(%arg0: i32) -> (i32, i32) {
    %c0_i32 = arith.constant 0 : i32
    %c0_i32_0 = arith.constant 0 : i32
    return %arg0, %c0_i32 : i32, i32
  }
  func.func @transform_1(%arg0: i32) -> (i32, i32) {
    %c0_i32 = arith.constant 0 : i32
    %c0_i32_0 = arith.constant 0 : i32
    %c0_i32_1 = arith.constant 0 : i32
    return %c0_i32, %c0_i32_0 : i32, i32
  }
  func.func @transform_2(%arg0: i32) -> (i32, i32) {
    %c0_i32 = arith.constant 0 : i32
    %c0_i32_0 = arith.constant 0 : i32
    %c0_i32_1 = arith.constant 0 : i32
    return %c0_i32, %c0_i32_0 : i32, i32
  }
  func.func @transform_3(%arg0: i32) -> (i32, i32) {
    %c0_i32 = arith.constant 0 : i32
    %c0_i32_0 = arith.constant 0 : i32
    return %arg0, %c0_i32 : i32, i32
  }
}

module attributes {stable_mosaic.version = 11 : i64} {
  func.func @_fused_embed_kernel(%arg0: i32, %arg1: memref<16x2xi32, #tpu.memory_space<vmem>>, %arg2: memref<32x128xbf16, #tpu.memory_space<vmem>>, %arg3: memref<32x128xbf16, #tpu.memory_space<vmem>>, %arg4: memref<16x128xf32, #tpu.memory_space<vmem>>) attributes {dimension_semantics = [#tpu.dimension_semantics<parallel>], iteration_bounds = array<i64: 1>, scalar_prefetch = 0 : i64, scratch_operands = 0 : i64, tpu.core_type = #tpu.core_type<tc>, window_params = [{transform_indices = @transform_0, window_bounds = array<i64: 16, 2>}, {pipeline_mode = #tpu.pipeline_mode<synchronous>, transform_indices = @transform_1, window_bounds = array<i64: 32, 128>}, {pipeline_mode = #tpu.pipeline_mode<synchronous>, transform_indices = @transform_2, window_bounds = array<i64: 32, 128>}, {transform_indices = @transform_3, window_bounds = array<i64: 16, 128>}]} {
    %c0 = arith.constant 0 : index
    %c0_0 = arith.constant 0 : index
    %0 = vector.load %arg1[%c0, %c0_0] : memref<16x2xi32, #tpu.memory_space<vmem>>, vector<16x2xi32>
    %1 = tpu.iota {dimensions = array<i32: 1>} : vector<16x32xi32>
    %2 = vector.extract_strided_slice %0 {offsets = [0, 0], sizes = [16, 1], strides = [1, 1]} : vector<16x2xi32> to vector<16x1xi32>
    %c0_i32 = arith.constant 0 : i32
    %c6_i32 = arith.constant 6 : i32
    %3 = vector.broadcast %c0_i32 : i32 to vector<16x1xi32>
    %4 = arith.maxsi %3, %2 : vector<16x1xi32>
    %5 = vector.broadcast %c6_i32 : i32 to vector<16x1xi32>
    %6 = arith.minsi %5, %4 : vector<16x1xi32>
    %c0_i32_1 = arith.constant 0 : i32
    %7 = vector.broadcast %c0_i32_1 : i32 to vector<16x1xi32>
    %8 = arith.addi %6, %7 : vector<16x1xi32>
    %9 = vector.broadcast %8 : vector<16x1xi32> to vector<16x32xi32>
    %10 = arith.cmpi eq, %1, %9 : vector<16x32xi32>
    %11 = arith.extui %10 : vector<16x32xi1> to vector<16x32xi32>
    %12 = arith.sitofp %11 : vector<16x32xi32> to vector<16x32xf32>
    %13 = arith.truncf %12 : vector<16x32xf32> to vector<16x32xbf16>
    %14 = vector.extract_strided_slice %0 {offsets = [0, 1], sizes = [16, 1], strides = [1, 1]} : vector<16x2xi32> to vector<16x1xi32>
    %c0_i32_2 = arith.constant 0 : i32
    %c22_i32 = arith.constant 22 : i32
    %15 = vector.broadcast %c0_i32_2 : i32 to vector<16x1xi32>
    %16 = arith.maxsi %15, %14 : vector<16x1xi32>
    %17 = vector.broadcast %c22_i32 : i32 to vector<16x1xi32>
    %18 = arith.minsi %17, %16 : vector<16x1xi32>
    %c7_i32 = arith.constant 7 : i32
    %19 = vector.broadcast %c7_i32 : i32 to vector<16x1xi32>
    %20 = arith.addi %18, %19 : vector<16x1xi32>
    %21 = vector.broadcast %20 : vector<16x1xi32> to vector<16x32xi32>
    %22 = arith.cmpi eq, %1, %21 : vector<16x32xi32>
    %23 = arith.extui %22 : vector<16x32xi1> to vector<16x32xi32>
    %24 = arith.sitofp %23 : vector<16x32xi32> to vector<16x32xf32>
    %25 = arith.truncf %24 : vector<16x32xf32> to vector<16x32xbf16>
    %26 = arith.addf %13, %25 : vector<16x32xbf16>
    %c0_3 = arith.constant 0 : index
    %c0_4 = arith.constant 0 : index
    %27 = vector.load %arg2[%c0_3, %c0_4] : memref<32x128xbf16, #tpu.memory_space<vmem>>, vector<32x128xbf16>
    %cst = arith.constant dense<0.000000e+00> : vector<16x128xf32>
    %28 = tpu.matmul %26, %27, %cst {dimension_numbers = #tpu.dot_dimension_numbers<[1], [0], [0], [1], [0, 0, 1, 1], [], []>} : vector<16x32xbf16>, vector<32x128xbf16>, vector<16x128xf32> -> vector<16x128xf32>
    %c0_5 = arith.constant 0 : index
    %c0_6 = arith.constant 0 : index
    %29 = vector.load %arg3[%c0_5, %c0_6] : memref<32x128xbf16, #tpu.memory_space<vmem>>, vector<32x128xbf16>
    %cst_7 = arith.constant dense<0.000000e+00> : vector<16x128xf32>
    %30 = tpu.matmul %26, %29, %cst_7 {dimension_numbers = #tpu.dot_dimension_numbers<[1], [0], [0], [1], [0, 0, 1, 1], [], []>} : vector<16x32xbf16>, vector<32x128xbf16>, vector<16x128xf32> -> vector<16x128xf32>
    %31 = arith.addf %28, %30 : vector<16x128xf32>
    %c0_8 = arith.constant 0 : index
    %c0_9 = arith.constant 0 : index
    %32 = vector.load %arg4[%c0_8, %c0_9] : memref<16x128xf32, #tpu.memory_space<vmem>>, vector<16x128xf32>
    tpu.vector_store %arg4[%c0_8, %c0_9], %31 {strides = array<i32>} : memref<16x128xf32, #tpu.memory_space<vmem>>, vector<16x128xf32>,
    return
  }
  func.func @transform_0(%arg0: i32) -> (i32, i32) {
    %c0_i32 = arith.constant 0 : i32
    %c0_i32_0 = arith.constant 0 : i32
    return %arg0, %c0_i32 : i32, i32
  }
  func.func @transform_1(%arg0: i32) -> (i32, i32) {
    %c0_i32 = arith.constant 0 : i32
    %c0_i32_0 = arith.constant 0 : i32
    %c0_i32_1 = arith.constant 0 : i32
    return %c0_i32, %c0_i32_0 : i32, i32
  }
  func.func @transform_2(%arg0: i32) -> (i32, i32) {
    %c0_i32 = arith.constant 0 : i32
    %c0_i32_0 = arith.constant 0 : i32
    %c0_i32_1 = arith.constant 0 : i32
    return %c0_i32, %c0_i32_0 : i32, i32
  }
  func.func @transform_3(%arg0: i32) -> (i32, i32) {
    %c0_i32 = arith.constant 0 : i32
    %c0_i32_0 = arith.constant 0 : i32
    return %arg0, %c0_i32 : i32, i32
  }
}

</mosaic_0001>

<bundles_post_ra>
// kernel: tpu_custom_call.1
= control target key start
LH: loop header
LB: loop body
LE: loop exit
PB: predicated region body
PF: predicated region fallthrough
CT: control target
= control target key end

     0   :  { %8 = vsyncpa [#allocation3], 0  ;;  %s307_s0 = inlined_call_operand.vmem [shape: s32[16,2], index: 0, kind: input, shape index: {}]   ;;  %s308_s1 = inlined_call_operand.vmem [shape: bf16[32,128], index: 1, kind: input, shape index: {}]   ;;  %s309_s2 = inlined_call_operand.hbm [shape: bf16[32,128], index: 2, kind: input, shape index: {}]   ;;  %s310_s3 = inlined_call_operand.hbm [shape: f32[16,128], index: 3, kind: output, shape index: {}]  }
   0x1   :  { %9 = vsyncpa [#allocation4], 0  ;;  %s18_s14 = sshll.u32 %s309_s2, 4  ;;  %s260_s15 = smov [#allocation2]   ;;  %s19_s14 = int_to_ptr.hbm [resolvable:$true] %s18_s14 }
   0x2   :  { %s20_s16 = sshll.u32 %s260_s15, 4  ;;  %s261_s17 = smov 64   ;;  %s21_s16 = int_to_ptr.vmem [resolvable:$true] %s20_s16 }
   0x3   :  { %s262_s18 = smov 4  }
   0x4   :  { %26 = dma.hbm_to_vmem [thread:$0]  %s19_s14, 256, %s21_s16, [#allocation3], %s261_s17, %s261_s17, %s262_s18  }
   0x5   :  { %256 = dma.done.wait [#allocation3], 256  }
   0x6   :  { %257 = vsyncadd [#allocation3], 4294967040  ;;  %v263_v0 = vmov 0   ;;  %v264_v1 = vmov 1   ;;  %v32_v2 = vld [vmem:[%s307_s0] sm:$0xff]  ;;  %v33_v3 = vld [vmem:[%s307_s0 + $0x8] sm:$0xff]  ;;  %v34_v16 = vlaneseq }
   0x7   :  { %205 = vset.pattern.permute.xlu0 %v263_v0  ;;  %206 = vset.pattern.permute.xlu1 %v264_v1  ;;  %vm36_vm0 = vcmp.gt.s32.totalorder %v32_v2, 0  ;;  %vm38_vm1 = vcmp.gt.s32.totalorder %v33_v3, 0  ;;  %v195_v12 = vld [vmem:[#allocation2 + $0x8] sm:$0xff]  ;;  %v194_v14 = vld [vmem:[#allocation2] sm:$0xff]  ;;  %v265_v21 = vmov 0.0   ;;  %vm105_vm10 = vcmask 261120  }
   0x8   :  { %v37_v4 = vsel %vm36_vm0, %v32_v2, 0  ;;  %v39_v5 = vsel %vm38_vm1, %v33_v3, 0  ;;  %v193_v13 = vld [vmem:[%s308_s1 + $0x8] sm:$0xff]  ;;  %115 = vmatpush.bf16.msra.mxu0 %v195_v12  ;;  %v192_v15 = vld [vmem:[%s308_s1] sm:$0xff]  ;;  %v35_v19 = vand.u32 127, %v34_v16  ;;  %s266_s1 = smov [#allocation5]  }
   0x9   :  { %vm40_vm2 = vcmp.lt.s32.totalorder %v37_v4, 6  ;;  %vm58_vm3 = vcmp.lt.s32.totalorder %v37_v4, 22  ;;  %vm60_vm4 = vcmp.lt.s32.totalorder %v39_v5, 22  ;;  %vm42_vm5 = vcmp.lt.s32.totalorder %v39_v5, 6  ;;  %141 = vmatpush.bf16.msra.mxu1 %v193_v13  ;;  %s155_s25 = sshll.u32 %s266_s1, 4  ;;  %s157_s28 = sshll.u32 %s310_s3, 4  ;;  %s156_s25 = int_to_ptr.vmem [resolvable:$true] %s155_s25  ;;  %s158_s28 = int_to_ptr.hbm [resolvable:$true] %s157_s28 }
   0xa   :  { %v41_v6 = vsel %vm40_vm2, %v37_v4, 6  ;;  %v59_v7 = vsel %vm58_vm3, %v37_v4, 22  ;;  %v61_v9 = vsel %vm60_vm4, %v39_v5, 22  ;;  %v43_v10 = vsel %vm42_vm5, %v39_v5, 6  ;;  %s267_s29 = smov 128   ;;  %s268_s30 = smov 8  }
   0xb   :  { %45 = vperm.xlu0 %205, %v41_v6   ;;  %v62_v8 = vadd.s32 7, %v59_v7  ;;  %v63_v11 = vadd.s32 7, %v61_v9 }
   0xc   :  { %116 = vmatpush.bf16.msra.mxu0 %v194_v14 }
   0xd   :  { %65 = vperm.xlu1 %206, %v62_v8   ;;  %142 = vmatpush.bf16.msra.mxu1 %v192_v15 }
  0x13   :  { %48 = vperm.xlu0 %205, %v43_v10  }
  0x15   :  { %68 = vperm.xlu1 %206, %v63_v11  }
  0x1b   :  { %207 = vset.pattern.permute.xlu0 %v264_v1 }
  0x7d   :  { %v46_v17 = vpop.permute.xlu0 %45 }
  0x7e   :  { %vm50_vm6 = vcmp.eq.s32.totalorder %v35_v19, %v46_v17 }
  0x7f   :  { %v66_v18 = vpop.permute.xlu1 %65  ;;  %v170_v22 = vsel %vm50_vm6, 1.0, %v265_v21 }
  0x80   :  { %vm70_vm7 = vcmp.eq.s32.totalorder %v35_v19, %v66_v18 }
  0x81   :  { %v172_v23 = vsel %vm70_vm7, 1.0, %v265_v21 }
  0x82   :  { %v82_v27 = vadd.f32 %v172_v23, %v170_v22 }
  0x85   :  { %v49_v20 = vpop.permute.xlu0 %48 }
  0x86   :  { %vm51_vm8 = vcmp.eq.s32.totalorder %v35_v19, %v49_v20 }
  0x87   :  { %v69_v24 = vpop.permute.xlu1 %68  ;;  %v171_v25 = vsel %vm51_vm8, 1.0, %v265_v21 }
  0x88   :  { %vm71_vm9 = vcmp.eq.s32.totalorder %v35_v19, %v69_v24 }
  0x89   :  { %v173_v26 = vsel %vm71_vm9, 1.0, %v265_v21 }
  0x8a   :  { %v83_v28 = vadd.f32 %v173_v26, %v171_v25 }
  0x8c   :  { %v84_v29 = vpack.c.bf16 %v83_v28, %v82_v27 }
  0x8e   :  { %182 = vmatmul.msk.bf16.vlgmr.msra.gmra.mxu0 %vm105_vm10, %v84_v29  ;;  %191 = vmatmul.msk.bf16.vlgmr.msra.gmra.mxu1 %vm105_vm10, %v84_v29 }
 0x10b   :  { %v118_v30 = vpop.f32.mrf.mxu0  ;;  %v144_v31 = vpop.f32.mrf.mxu1 }
 0x10c   :  { %v145_v32 = vadd.f32 %v144_v31, %v118_v30 }
 0x10e   :  { %149 = vst [vmem:[#allocation5] sm:$0xff] %v145_v32 }
 0x113   :  { %v120_v33 = vpop.f32.mrf.mxu0  ;;  %v146_v34 = vpop.f32.mrf.mxu1 }
 0x114   :  { %v147_v35 = vadd.f32 %v146_v34, %v120_v33 }
 0x116   :  { %150 = vst [vmem:[#allocation5 + $0x8] sm:$0xff] %v147_v35 }
 0x117   :  { %163 = dma.vmem_to_hbm [thread:$0]  %s156_s25, 256, %s158_s28, [#allocation4], %s267_s29, %s267_s29, %s268_s30  }
 0x118   :  { %258 = dma.done.wait [#allocation4], 256  }
 0x119   :  { %259 = vsyncadd [#allocation4], 4294967040 }
 0x11a   :  { %168 = vsyncpa [#allocation3], 1 }
 0x11b   :  { %169 = vsyncpa [#allocation4], 1 }

// kernel: tpu_custom_call.1
= control target key start
LH: loop header
LB: loop body
LE: loop exit
PB: predicated region body
PF: predicated region fallthrough
CT: control target
= control target key end

     0   :  { %8 = vsyncpa [#allocation3], 0  ;;  %s307_s0 = inlined_call_operand.vmem [shape: s32[16,2], index: 0, kind: input, shape index: {}]   ;;  %s308_s1 = inlined_call_operand.vmem [shape: bf16[32,128], index: 1, kind: input, shape index: {}]   ;;  %s309_s2 = inlined_call_operand.hbm [shape: bf16[32,128], index: 2, kind: input, shape index: {}]   ;;  %s310_s3 = inlined_call_operand.hbm [shape: f32[16,128], index: 3, kind: output, shape index: {}]  }
   0x1   :  { %9 = vsyncpa [#allocation4], 0  ;;  %s18_s14 = sshll.u32 %s309_s2, 4  ;;  %s260_s15 = smov [#allocation2]   ;;  %s19_s14 = int_to_ptr.hbm [resolvable:$true] %s18_s14 }
   0x2   :  { %s20_s16 = sshll.u32 %s260_s15, 4  ;;  %s261_s17 = smov 64   ;;  %s21_s16 = int_to_ptr.vmem [resolvable:$true] %s20_s16 }
   0x3   :  { %s262_s18 = smov 4  }
   0x4   :  { %26 = dma.hbm_to_vmem [thread:$0]  %s19_s14, 256, %s21_s16, [#allocation3], %s261_s17, %s261_s17, %s262_s18  }
   0x5   :  { %256 = dma.done.wait [#allocation3], 256  }
   0x6   :  { %257 = vsyncadd [#allocation3], 4294967040  ;;  %v263_v0 = vmov 0   ;;  %v264_v1 = vmov 1   ;;  %v32_v2 = vld [vmem:[%s307_s0] sm:$0xff]  ;;  %v33_v3 = vld [vmem:[%s307_s0 + $0x8] sm:$0xff]  ;;  %v34_v16 = vlaneseq }
   0x7   :  { %205 = vset.pattern.permute.xlu0 %v263_v0  ;;  %206 = vset.pattern.permute.xlu1 %v264_v1  ;;  %vm36_vm0 = vcmp.gt.s32.totalorder %v32_v2, 0  ;;  %vm38_vm1 = vcmp.gt.s32.totalorder %v33_v3, 0  ;;  %v195_v12 = vld [vmem:[#allocation2 + $0x8] sm:$0xff]  ;;  %v194_v14 = vld [vmem:[#allocation2] sm:$0xff]  ;;  %v265_v21 = vmov 0.0   ;;  %vm105_vm10 = vcmask 261120  }
   0x8   :  { %v37_v4 = vsel %vm36_vm0, %v32_v2, 0  ;;  %v39_v5 = vsel %vm38_vm1, %v33_v3, 0  ;;  %v193_v13 = vld [vmem:[%s308_s1 + $0x8] sm:$0xff]  ;;  %115 = vmatpush.bf16.msra.mxu0 %v195_v12  ;;  %v192_v15 = vld [vmem:[%s308_s1] sm:$0xff]  ;;  %v35_v19 = vand.u32 127, %v34_v16  ;;  %s266_s1 = smov [#allocation5]  }
   0x9   :  { %vm40_vm2 = vcmp.lt.s32.totalorder %v37_v4, 6  ;;  %vm58_vm3 = vcmp.lt.s32.totalorder %v37_v4, 22  ;;  %vm60_vm4 = vcmp.lt.s32.totalorder %v39_v5, 22  ;;  %vm42_vm5 = vcmp.lt.s32.totalorder %v39_v5, 6  ;;  %141 = vmatpush.bf16.msra.mxu1 %v193_v13  ;;  %s155_s25 = sshll.u32 %s266_s1, 4  ;;  %s157_s28 = sshll.u32 %s310_s3, 4  ;;  %s156_s25 = int_to_ptr.vmem [resolvable:$true] %s155_s25  ;;  %s158_s28 = int_to_ptr.hbm [resolvable:$true] %s157_s28 }
   0xa   :  { %v41_v6 = vsel %vm40_vm2, %v37_v4, 6  ;;  %v59_v7 = vsel %vm58_vm3, %v37_v4, 22  ;;  %v61_v9 = vsel %vm60_vm4, %v39_v5, 22  ;;  %v43_v10 = vsel %vm42_vm5, %v39_v5, 6  ;;  %s267_s29 = smov 128   ;;  %s268_s30 = smov 8  }
   0xb   :  { %45 = vperm.xlu0 %205, %v41_v6   ;;  %v62_v8 = vadd.s32 7, %v59_v7  ;;  %v63_v11 = vadd.s32 7, %v61_v9 }
   0xc   :  { %116 = vmatpush.bf16.msra.mxu0 %v194_v14 }
   0xd   :  { %65 = vperm.xlu1 %206, %v62_v8   ;;  %142 = vmatpush.bf16.msra.mxu1 %v192_v15 }
  0x13   :  { %48 = vperm.xlu0 %205, %v43_v10  }
  0x15   :  { %68 = vperm.xlu1 %206, %v63_v11  }
  0x1b   :  { %207 = vset.pattern.permute.xlu0 %v264_v1 }
  0x7d   :  { %v46_v17 = vpop.permute.xlu0 %45 }
  0x7e   :  { %vm50_vm6 = vcmp.eq.s32.totalorder %v35_v19, %v46_v17 }
  0x7f   :  { %v66_v18 = vpop.permute.xlu1 %65  ;;  %v170_v22 = vsel %vm50_vm6, 1.0, %v265_v21 }
  0x80   :  { %vm70_vm7 = vcmp.eq.s32.totalorder %v35_v19, %v66_v18 }
  0x81   :  { %v172_v23 = vsel %vm70_vm7, 1.0, %v265_v21 }
  0x82   :  { %v82_v27 = vadd.f32 %v172_v23, %v170_v22 }
  0x85   :  { %v49_v20 = vpop.permute.xlu0 %48 }
  0x86   :  { %vm51_vm8 = vcmp.eq.s32.totalorder %v35_v19, %v49_v20 }
  0x87   :  { %v69_v24 = vpop.permute.xlu1 %68  ;;  %v171_v25 = vsel %vm51_vm8, 1.0, %v265_v21 }
  0x88   :  { %vm71_vm9 = vcmp.eq.s32.totalorder %v35_v19, %v69_v24 }
  0x89   :  { %v173_v26 = vsel %vm71_vm9, 1.0, %v265_v21 }
  0x8a   :  { %v83_v28 = vadd.f32 %v173_v26, %v171_v25 }
  0x8c   :  { %v84_v29 = vpack.c.bf16 %v83_v28, %v82_v27 }
  0x8e   :  { %182 = vmatmul.msk.bf16.vlgmr.msra.gmra.mxu0 %vm105_vm10, %v84_v29  ;;  %191 = vmatmul.msk.bf16.vlgmr.msra.gmra.mxu1 %vm105_vm10, %v84_v29 }
 0x10b   :  { %v118_v30 = vpop.f32.mrf.mxu0  ;;  %v144_v31 = vpop.f32.mrf.mxu1 }
 0x10c   :  { %v145_v32 = vadd.f32 %v144_v31, %v118_v30 }
 0x10e   :  { %149 = vst [vmem:[#allocation5] sm:$0xff] %v145_v32 }
 0x113   :  { %v120_v33 = vpop.f32.mrf.mxu0  ;;  %v146_v34 = vpop.f32.mrf.mxu1 }
 0x114   :  { %v147_v35 = vadd.f32 %v146_v34, %v120_v33 }
 0x116   :  { %150 = vst [vmem:[#allocation5 + $0x8] sm:$0xff] %v147_v35 }
 0x117   :  { %163 = dma.vmem_to_hbm [thread:$0]  %s156_s25, 256, %s158_s28, [#allocation4], %s267_s29, %s267_s29, %s268_s30  }
 0x118   :  { %258 = dma.done.wait [#allocation4], 256  }
 0x119   :  { %259 = vsyncadd [#allocation4], 4294967040 }
 0x11a   :  { %168 = vsyncpa [#allocation3], 1 }
 0x11b   :  { %169 = vsyncpa [#allocation4], 1 }

</bundles_post_ra>
